<compile_context>
chip_gen: v5e
topology: v5e:2x2
jax: 0.10.0
libtpu: 0.0.40
codegen_flags: <defaults>
</compile_context>

<pallas_src>
import jax
import jax.numpy as jnp
from jax.experimental import pallas as pl
from jax.experimental.pallas import tpu as pltpu


# ---------------- static config ("args") ----------------
NUM_CLASSES = 8
CLIP = True
CLIP_THRESHOLD = 10.0
DROGAMMA = 0.1          # unused in the 'ce' forward path
BUDGET = 0.5
ROB_ALPHA = 1.0         # unused in the 'ce' forward path
LOSS_TYPE = "ce"


def _klrs_partials_kernel(logits_ref, tgt_ref, w_ref,
                          cls_sum_ref, cls_cnt_ref, tot_ref):
    """One grid step over a lane-dense batch tile.

    logits_ref : (C, T) f32  -- classes on sublanes, batch samples on lanes
    tgt_ref    : (1, T) i32  -- padded samples carry target = -1
    w_ref      : (C, 1) f32  -- per-class CE weights
    cls_sum_ref: (C, 1) f32  -- accumulated sum of per-sample loss, per class
    cls_cnt_ref: (C, 1) f32  -- accumulated sample count, per class
    tot_ref    : (1, 1) f32  -- accumulated sum of per-sample loss
    """
    @pl.when(pl.program_id(0) == 0)
    def _():
        cls_sum_ref[...] = jnp.zeros_like(cls_sum_ref)
        cls_cnt_ref[...] = jnp.zeros_like(cls_cnt_ref)
        tot_ref[...] = jnp.zeros_like(tot_ref)

    logits = logits_ref[...]                      # (C, T)
    tgt = tgt_ref[...]                            # (1, T) int32
    w = w_ref[...]                                # (C, 1)
    c, t = logits.shape

    # class mask rebuilt in-kernel (no dense one-hot from HBM)
    cls_ids = jax.lax.broadcasted_iota(jnp.int32, (c, t), 0)
    maskf = (cls_ids == tgt).astype(jnp.float32)  # (C, T); all-zero column for pad (-1)

    # per-sample weighted cross entropy, class axis = sublanes
    col_max = jnp.max(logits, axis=0, keepdims=True)                        # (1, T)
    lse = jnp.log(jnp.sum(jnp.exp(logits - col_max), axis=0,
                          keepdims=True)) + col_max                         # (1, T)
    tgt_logit = jnp.sum(maskf * logits, axis=0, keepdims=True)              # (1, T)
    w_n = jnp.sum(maskf * w, axis=0, keepdims=True)                         # (1, T)
    loss = w_n * (lse - tgt_logit)                # (1, T); exactly 0 on padded lanes

    # streaming partial reductions (lane reductions -> (C,1)/(1,1))
    cls_sum_ref[...] += jnp.sum(maskf * loss, axis=1, keepdims=True)        # (C, 1)
    cls_cnt_ref[...] += jnp.sum(maskf, axis=1, keepdims=True)               # (C, 1)
    tot_ref[...] += jnp.sum(loss, axis=1, keepdims=True)                    # (1, 1)


def _round_up(x, m):
    return ((x + m - 1) // m) * m


def klrs_forward(output, target, cls_weights, my_lambda,
                 *, num_classes=NUM_CLASSES, budget=BUDGET,
                 clip=CLIP, clip_threshold=CLIP_THRESHOLD, max_tile_n=4096):
    """output: (N, C) f32, target: (N,) int, cls_weights: (C,) f32,
    my_lambda: python/scalar float (static branch, as in the PyTorch `if`).
    Returns scalar f32 abloss."""
    output = output.astype(jnp.float32)
    n, c = output.shape
    assert c == num_classes

    # ---- lane-dense layout: (C, N_pad) with batch on lanes, zero-padded batch ----
    n_min = _round_up(n, 128)
    tile_n = min(max_tile_n, n_min)               # multiple of 128, a few hundred KiB VMEM max
    n_pad = _round_up(n, tile_n)
    logits_t = jnp.pad(output.T, ((0, 0), (0, n_pad - n)))                  # (C, N_pad)
    tgt = jnp.pad(target.astype(jnp.int32), (0, n_pad - n),
                  constant_values=-1).reshape(1, n_pad)                     # (1, N_pad)
    w2d = cls_weights.astype(jnp.float32).reshape(c, 1)                     # (C, 1)

    grid = (n_pad // tile_n,)
    cls_sum, cls_cnt, tot = pl.pallas_call(
        _klrs_partials_kernel,
        out_shape=(jax.ShapeDtypeStruct((c, 1), jnp.float32),
                   jax.ShapeDtypeStruct((c, 1), jnp.float32),
                   jax.ShapeDtypeStruct((1, 1), jnp.float32)),
        grid=grid,
        in_specs=[
            pl.BlockSpec((c, tile_n), lambda i: (0, i)),   # logits tile
            pl.BlockSpec((1, tile_n), lambda i: (0, i)),   # target tile
            pl.BlockSpec((c, 1), lambda i: (0, 0)),        # class weights (resident)
        ],
        out_specs=(
            pl.BlockSpec((c, 1), lambda i: (0, 0)),        # accumulators, resident
            pl.BlockSpec((c, 1), lambda i: (0, 0)),
            pl.BlockSpec((1, 1), lambda i: (0, 0)),
        ),
        compiler_params=pltpu.CompilerParams(
            dimension_semantics=("arbitrary",)),           # reduction axis
    )(logits_t, tgt, w2d)

    # ---- tiny scalar finalize in the wrapper (matches torch's Python-level branch) ----
    nf = jnp.float32(n)
    if my_lambda >= 200:
        return tot[0, 0] / nf
    cls_mean = cls_sum[:, 0] / cls_cnt[:, 0]      # 0/0 -> NaN reproduces torch mean-of-empty
    z = (cls_mean - budget) / my_lambda
    if clip:
        z = jnp.minimum(z, jnp.float32(clip_threshold))
    p = jnp.exp(z)
    # PyTorch multiplies by len(index) == 1 (tuple-length quirk), then divides by N.
    return jnp.sum(p * cls_mean) / nf


def _klrs_reference(output, target, cls_weights, my_lambda):
    """Pure-JAX reference mirroring the PyTorch forward."""
    output = output.astype(jnp.float32)
    n, c = output.shape
    logp = jax.nn.log_softmax(output, axis=-1)
    loss = -cls_weights[target] * logp[jnp.arange(n), target]               # (N,)
    if my_lambda >= 200:
        return jnp.mean(loss)
    onehot = jax.nn.one_hot(target, c, dtype=jnp.float32)
    cls_mean = (onehot * loss[:, None]).sum(0) / onehot.sum(0)
    z = (cls_mean - BUDGET) / my_lambda
    if CLIP:
        z = jnp.minimum(z, CLIP_THRESHOLD)
    p = jnp.exp(z)
    return jnp.sum(p * cls_mean) / n


if __name__ == "__main__":
    key = jax.random.PRNGKey(0)
    k1, k2 = jax.random.split(key)

    N, C = 16, NUM_CLASSES
    output = jax.random.normal(k1, (N, C), dtype=jnp.float32)
    # ensure every class appears (avoids the NaN-on-empty-class PyTorch quirk)
    target = jnp.arange(N, dtype=jnp.int32) % C
    cls_weights = 0.5 + jax.random.uniform(k2, (C,), dtype=jnp.float32)

    # DRO branch (myLambda < 200)
    out_dro = klrs_forward(output, target, cls_weights, 5.0)
    jax.block_until_ready(out_dro)
    ref_dro = _klrs_reference(output, target, cls_weights, 5.0)
    assert jnp.allclose(out_dro, ref_dro, rtol=1e-5, atol=1e-5), (out_dro, ref_dro)

    # plain-mean branch (myLambda >= 200)
    out_mean = klrs_forward(output, target, cls_weights, 300.0)
    jax.block_until_ready(out_mean)
    ref_mean = _klrs_reference(output, target, cls_weights, 300.0)
    assert jnp.allclose(out_mean, ref_mean, rtol=1e-5, atol=1e-5), (out_mean, ref_mean)

    print("KERNEL_OK")
</pallas_src>

<mosaic_0001>
module attributes {stable_mosaic.version = 11 : i64} {
  func.func @_klrs_partials_kernel(%arg0: i32, %arg1: memref<8x128xf32, #tpu.memory_space<vmem>>, %arg2: memref<1x128xi32, #tpu.memory_space<vmem>>, %arg3: memref<8x1xf32, #tpu.memory_space<vmem>>, %arg4: memref<8x1xf32, #tpu.memory_space<vmem>>, %arg5: memref<8x1xf32, #tpu.memory_space<vmem>>, %arg6: memref<1x1xf32, #tpu.memory_space<vmem>>) attributes {dimension_semantics = [#tpu.dimension_semantics<arbitrary>], iteration_bounds = array<i64: 1>, scalar_prefetch = 0 : i64, scratch_operands = 0 : i64, tpu.core_type = #tpu.core_type<tc>, window_params = [{transform_indices = @transform_0, window_bounds = array<i64: 8, 128>}, {transform_indices = @transform_1, window_bounds = array<i64: 1, 128>}, {pipeline_mode = #tpu.pipeline_mode<synchronous>, transform_indices = @transform_2, window_bounds = array<i64: 8, 1>}, {pipeline_mode = #tpu.pipeline_mode<synchronous>, transform_indices = @transform_3, window_bounds = array<i64: 8, 1>}, {pipeline_mode = #tpu.pipeline_mode<synchronous>, transform_indices = @transform_4, window_bounds = array<i64: 8, 1>}, {pipeline_mode = #tpu.pipeline_mode<synchronous>, transform_indices = @transform_5, window_bounds = array<i64: 1, 1>}]} {
    %c0_i32 = arith.constant 0 : i32
    %0 = arith.cmpi eq, %arg0, %c0_i32 : i32
    %1 = arith.extui %0 : i1 to i32
    %c0_i32_0 = arith.constant 0 : i32
    %2 = arith.cmpi ne, %1, %c0_i32_0 : i32
    scf.if %2 {
      %cst_24 = arith.constant 0.000000e+00 : f32
      %46 = vector.broadcast %cst_24 : f32 to vector<8x1xf32>
      %c0_25 = arith.constant 0 : index
      %c0_26 = arith.constant 0 : index
      %47 = vector.load %arg4[%c0_25, %c0_26] : memref<8x1xf32, #tpu.memory_space<vmem>>, vector<8x1xf32>
      tpu.vector_store %arg4[%c0_25, %c0_26], %46 {strides = array<i32>} : memref<8x1xf32, #tpu.memory_space<vmem>>, vector<8x1xf32>,
      %cst_27 = arith.constant 0.000000e+00 : f32
      %48 = vector.broadcast %cst_27 : f32 to vector<8x1xf32>
      %c0_28 = arith.constant 0 : index
      %c0_29 = arith.constant 0 : index
      %49 = vector.load %arg5[%c0_28, %c0_29] : memref<8x1xf32, #tpu.memory_space<vmem>>, vector<8x1xf32>
      tpu.vector_store %arg5[%c0_28, %c0_29], %48 {strides = array<i32>} : memref<8x1xf32, #tpu.memory_space<vmem>>, vector<8x1xf32>,
      %cst_30 = arith.constant 0.000000e+00 : f32
      %50 = vector.broadcast %cst_30 : f32 to vector<1x1xf32>
      %c0_31 = arith.constant 0 : index
      %c0_32 = arith.constant 0 : index
      %51 = vector.load %arg6[%c0_31, %c0_32] : memref<1x1xf32, #tpu.memory_space<vmem>>, vector<1x1xf32>
      tpu.vector_store %arg6[%c0_31, %c0_32], %50 {strides = array<i32>} : memref<1x1xf32, #tpu.memory_space<vmem>>, vector<1x1xf32>,
    } else {
    }
    %c0 = arith.constant 0 : index
    %c0_1 = arith.constant 0 : index
    %3 = vector.load %arg1[%c0, %c0_1] : memref<8x128xf32, #tpu.memory_space<vmem>>, vector<8x128xf32>
    %c0_2 = arith.constant 0 : index
    %c0_3 = arith.constant 0 : index
    %4 = vector.load %arg2[%c0_2, %c0_3] : memref<1x128xi32, #tpu.memory_space<vmem>>, vector<1x128xi32>
    %c0_4 = arith.constant 0 : index
    %c0_5 = arith.constant 0 : index
    %5 = vector.load %arg3[%c0_4, %c0_5] : memref<8x1xf32, #tpu.memory_space<vmem>>, vector<8x1xf32>
    %6 = tpu.iota {dimensions = array<i32: 0>} : vector<8x128xi32>
    %7 = vector.broadcast %4 : vector<1x128xi32> to vector<8x128xi32>
    %8 = arith.cmpi eq, %6, %7 : vector<8x128xi32>
    %9 = arith.extui %8 : vector<8x128xi1> to vector<8x128xi32>
    %10 = arith.sitofp %9 : vector<8x128xi32> to vector<8x128xf32>
    %cst = arith.constant dense<0xFF800000> : vector<128xf32>
    %11 = vector.multi_reduction <maximumf>, %3, %cst [0] : vector<8x128xf32> to vector<128xf32>
    %12 = vector.shape_cast %11 : vector<128xf32> to vector<1x128xf32>
    %13 = vector.broadcast %12 : vector<1x128xf32> to vector<8x128xf32>
    %14 = arith.subf %3, %13 : vector<8x128xf32>
    %15 = math.exp %14 : vector<8x128xf32>
    %cst_6 = arith.constant dense<0.000000e+00> : vector<128xf32>
    %16 = vector.multi_reduction <add>, %15, %cst_6 [0] : vector<8x128xf32> to vector<128xf32>
    %17 = vector.shape_cast %16 : vector<128xf32> to vector<1x128xf32>
    %18 = math.log %17 : vector<1x128xf32>
    %19 = arith.addf %18, %12 : vector<1x128xf32>
    %20 = arith.mulf %10, %3 : vector<8x128xf32>
    %cst_7 = arith.constant dense<0.000000e+00> : vector<128xf32>
    %21 = vector.multi_reduction <add>, %20, %cst_7 [0] : vector<8x128xf32> to vector<128xf32>
    %22 = vector.shape_cast %21 : vector<128xf32> to vector<1x128xf32>
    %23 = vector.broadcast %5 : vector<8x1xf32> to vector<8x128xf32>
    %24 = arith.mulf %10, %23 : vector<8x128xf32>
    %cst_8 = arith.constant dense<0.000000e+00> : vector<128xf32>
    %25 = vector.multi_reduction <add>, %24, %cst_8 [0] : vector<8x128xf32> to vector<128xf32>
    %26 = vector.shape_cast %25 : vector<128xf32> to vector<1x128xf32>
    %27 = arith.subf %19, %22 : vector<1x128xf32>
    %28 = arith.mulf %26, %27 : vector<1x128xf32>
    %c0_9 = arith.constant 0 : index
    %c0_10 = arith.constant 0 : index
    %29 = vector.load %arg4[%c0_9, %c0_10] : memref<8x1xf32, #tpu.memory_space<vmem>>, vector<8x1xf32>
    %30 = vector.broadcast %28 : vector<1x128xf32> to vector<8x128xf32>
    %31 = arith.mulf %10, %30 : vector<8x128xf32>
    %cst_11 = arith.constant dense<0.000000e+00> : vector<8xf32>
    %32 = vector.multi_reduction <add>, %31, %cst_11 [1] : vector<8x128xf32> to vector<8xf32>
    %33 = vector.shape_cast %32 : vector<8xf32> to vector<8x1xf32>
    %34 = arith.addf %29, %33 : vector<8x1xf32>
    %c0_12 = arith.constant 0 : index
    %c0_13 = arith.constant 0 : index
    %35 = vector.load %arg4[%c0_12, %c0_13] : memref<8x1xf32, #tpu.memory_space<vmem>>, vector<8x1xf32>
    tpu.vector_store %arg4[%c0_12, %c0_13], %34 {strides = array<i32>} : memref<8x1xf32, #tpu.memory_space<vmem>>, vector<8x1xf32>,
    %c0_14 = arith.constant 0 : index
    %c0_15 = arith.constant 0 : index
    %36 = vector.load %arg5[%c0_14, %c0_15] : memref<8x1xf32, #tpu.memory_space<vmem>>, vector<8x1xf32>
    %cst_16 = arith.constant dense<0.000000e+00> : vector<8xf32>
    %37 = vector.multi_reduction <add>, %10, %cst_16 [1] : vector<8x128xf32> to vector<8xf32>
    %38 = vector.shape_cast %37 : vector<8xf32> to vector<8x1xf32>
    %39 = arith.addf %36, %38 : vector<8x1xf32>
    %c0_17 = arith.constant 0 : index
    %c0_18 = arith.constant 0 : index
    %40 = vector.load %arg5[%c0_17, %c0_18] : memref<8x1xf32, #tpu.memory_space<vmem>>, vector<8x1xf32>
    tpu.vector_store %arg5[%c0_17, %c0_18], %39 {strides = array<i32>} : memref<8x1xf32, #tpu.memory_space<vmem>>, vector<8x1xf32>,
    %c0_19 = arith.constant 0 : index
    %c0_20 = arith.constant 0 : index
    %41 = vector.load %arg6[%c0_19, %c0_20] : memref<1x1xf32, #tpu.memory_space<vmem>>, vector<1x1xf32>
    %cst_21 = arith.constant dense<0.000000e+00> : vector<1xf32>
    %42 = vector.multi_reduction <add>, %28, %cst_21 [1] : vector<1x128xf32> to vector<1xf32>
    %43 = vector.shape_cast %42 : vector<1xf32> to vector<1x1xf32>
    %44 = arith.addf %41, %43 : vector<1x1xf32>
    %c0_22 = arith.constant 0 : index
    %c0_23 = arith.constant 0 : index
    %45 = vector.load %arg6[%c0_22, %c0_23] : memref<1x1xf32, #tpu.memory_space<vmem>>, vector<1x1xf32>
    tpu.vector_store %arg6[%c0_22, %c0_23], %44 {strides = array<i32>} : memref<1x1xf32, #tpu.memory_space<vmem>>, vector<1x1xf32>,
    return
  }
  func.func @transform_0(%arg0: i32) -> (i32, i32) {
    %c0_i32 = arith.constant 0 : i32
    %c0_i32_0 = arith.constant 0 : i32
    return %c0_i32, %arg0 : i32, i32
  }
  func.func @transform_1(%arg0: i32) -> (i32, i32) {
    %c0_i32 = arith.constant 0 : i32
    %c0_i32_0 = arith.constant 0 : i32
    return %c0_i32, %arg0 : i32, i32
  }
  func.func @transform_2(%arg0: i32) -> (i32, i32) {
    %c0_i32 = arith.constant 0 : i32
    %c0_i32_0 = arith.constant 0 : i32
    %c0_i32_1 = arith.constant 0 : i32
    return %c0_i32, %c0_i32_0 : i32, i32
  }
  func.func @transform_3(%arg0: i32) -> (i32, i32) {
    %c0_i32 = arith.constant 0 : i32
    %c0_i32_0 = arith.constant 0 : i32
    %c0_i32_1 = arith.constant 0 : i32
    return %c0_i32, %c0_i32_0 : i32, i32
  }
  func.func @transform_4(%arg0: i32) -> (i32, i32) {
    %c0_i32 = arith.constant 0 : i32
    %c0_i32_0 = arith.constant 0 : i32
    %c0_i32_1 = arith.constant 0 : i32
    return %c0_i32, %c0_i32_0 : i32, i32
  }
  func.func @transform_5(%arg0: i32) -> (i32, i32) {
    %c0_i32 = arith.constant 0 : i32
    %c0_i32_0 = arith.constant 0 : i32
    %c0_i32_1 = arith.constant 0 : i32
    return %c0_i32, %c0_i32_0 : i32, i32
  }
}

</mosaic_0001>

<bundles_post_ra>
// kernel: tpu_custom_call.1
= control target key start
LH: loop header
LB: loop body
LE: loop exit
PB: predicated region body
PF: predicated region fallthrough
CT: control target
= control target key end

     0   :  { %s222_s0 = inlined_call_operand.vmem [shape: f32[8,128], index: 0, kind: input, shape index: {}]   ;;  %s223_s1 = inlined_call_operand.vmem [shape: s32[1,128], index: 1, kind: input, shape index: {}]   ;;  %s224_s2 = inlined_call_operand.vmem [shape: f32[8,1], index: 2, kind: input, shape index: {}]   ;;  %s225_s3 = inlined_call_operand.vmem [shape: f32[8,1], index: 3, kind: output, shape index: {0}]   ;;  %s226_s4 = inlined_call_operand.vmem [shape: f32[8,1], index: 4, kind: output, shape index: {1}]   ;;  %s227_s5 = inlined_call_operand.hbm [shape: f32[1,1], index: 5, kind: output, shape index: {2}]  }
   0x1   :  { %v29_v0 = vld [vmem:[%s224_s2] sm:$0xff] }
   0x2   :  { %11 = vsyncpa [#allocation3], 0  ;;  %v153_v1 = vmov 0   ;;  %v27_v2 = vld [vmem:[%s222_s0] sm:$0xff]  ;;  %v30_v12 = vlaneseq  ;;  %v154_v18 = vmov 0.0   ;;  %vm25_vm1 = vcmask 0  }
   0x3   :  { %121 = vset.pattern.permute.xlu0 %v153_v1  ;;  %v36_v3 = vrot.slane %v27_v2, 4  ;;  %v122_v15 = vld [vmem:[%s223_s1] ss:$0 sm:$0xff]  ;;  %26 = vst.msk [vmem:[#allocation2] sm:$0x1] %vm25_vm1, %v154_v18  ;;  %vm22_vm2 = vcmask 7168  }
   0x4   :  { %63 = vperm.xlu0 %121, %v29_v0   ;;  %v31_v14 = vshrl.u32 %v30_v12, 7  ;;  %23 = vst.msk [vmem:[%s225_s3] sm:$0xff] %vm22_vm2, %v154_v18  ;;  %s155_s25 = smov [#allocation2]   ;;  %s104_s29 = sshll.u32 %s227_s5, 4  ;;  %s105_s29 = int_to_ptr.hbm [resolvable:$true] %s104_s29 }
   0x5   :  { %v37_v4 = vmax.f32 %v27_v2, %v36_v3  ;;  %24 = vst.msk [vmem:[%s226_s4] sm:$0xff] %vm22_vm2, %v154_v18  ;;  %s102_s26 = sshll.u32 %s155_s25, 4  ;;  %s103_s26 = int_to_ptr.vmem [resolvable:$true] %s102_s26 }
   0x6   :  { %vm33_vm0 = vcmp.eq.s32.totalorder %v31_v14, %v122_v15 }
   0x7   :  { %v38_v5 = vrot.slane %v37_v4, 2  ;;  %v117_v19 = vsel %vm33_vm0, 1.0, %v154_v18 }
   0x8   :  { %v54_v21 = vmul.f32 %v117_v19, %v27_v2 }
   0x9   :  { %v39_v6 = vmax.f32 %v37_v4, %v38_v5 }
   0xa   :  { %v55_v23 = vrot.slane %v54_v21, 4  ;;  %v87_v44 = vld [vmem:[#allocation2] sm:$0x1] }
   0xb   :  { %v40_v7 = vrot.slane %v39_v6, 1  ;;  %v75_v46 = vld [vmem:[%s225_s3] sm:$0xff] }
   0xc   :  { %v56_v25 = vadd.f32 %v55_v23, %v54_v21  ;;  %v82_v50 = vld [vmem:[%s226_s4] sm:$0xff] }
   0xd   :  { %v41_v8 = vmax.f32 %v39_v6, %v40_v7 }
   0xe   :  { %v57_v26 = vrot.slane %v56_v25, 2 }
   0xf   :  { %v42_v9 = vsub.f32 %v27_v2, %v41_v8 }
  0x10   :  { %v58_v27 = vadd.f32 %v57_v26, %v56_v25 }
  0x11   :  { %v43_v10 = vmul.f32 1.442695, %v42_v9 }
  0x12   :  { %v59_v33 = vrot.slane %v58_v27, 1 }
  0x13   :  { %123 = vpow2.f32 %v43_v10 }
  0x14   :  { %v60_v37 = vadd.f32 %v59_v33, %v58_v27 }
  0x19   :  { %v124_v11 = vpop.eup %123 }
  0x1a   :  { %v45_v13 = vrot.slane %v124_v11, 4 }
  0x1c   :  { %v46_v16 = vadd.f32 %v124_v11, %v45_v13 }
  0x1e   :  { %v47_v17 = vrot.slane %v46_v16, 2 }
  0x20   :  { %v48_v20 = vadd.f32 %v47_v17, %v46_v16 }
  0x22   :  { %v49_v22 = vrot.slane %v48_v20, 1 }
  0x24   :  { %v50_v24 = vadd.f32 %v49_v22, %v48_v20 }
  0x26   :  { %125 = vlog2.f32 %v50_v24 }
  0x2c   :  { %v126_v28 = vpop.eup %125 }
  0x2d   :  { %v52_v32 = vmul.f32 0.6931472, %v126_v28 }
  0x2f   :  { %v53_v36 = vadd.f32 %v52_v32, %v41_v8 }
  0x31   :  { %v73_v40 = vsub.f32 %v53_v36, %v60_v37 }
  0x76   :  { %v64_v29 = vpop.permute.xlu0 %63 }
  0x77   :  { %v66_v30 = vmul.f32 %v117_v19, %v64_v29 }
  0x79   :  { %v67_v31 = vrot.slane %v66_v30, 4 }
  0x7b   :  { %v68_v34 = vadd.f32 %v67_v31, %v66_v30 }
  0x7d   :  { %v69_v35 = vrot.slane %v68_v34, 2 }
  0x7f   :  { %v70_v38 = vadd.f32 %v69_v35, %v68_v34 }
  0x81   :  { %v71_v39 = vrot.slane %v70_v38, 1 }
  0x83   :  { %v72_v41 = vadd.f32 %v71_v39, %v70_v38 }
  0x85   :  { %v74_v42 = vmul.f32 %v73_v40, %v72_v41 }
  0x87   :  { %88 = vadd.xlane.f32.xlu0 %v74_v42  ;;  %v76_v43 = vmul.f32 %v117_v19, %v74_v42 }
  0x89   :  { %77 = vadd.xlane.f32.xlu1 %v76_v43 }
  0x91   :  { %83 = vadd.xlane.f32.xlu1 %v117_v19 }
  0xfa   :  { %v89_v45 = vpop.xlane.xlu0 %88 }
  0xfb   :  { %v90_v47 = vadd.f32 %v89_v45, %v87_v44 }
  0xfc   :  { %v78_v48 = vpop.xlane.xlu1 %77 }
  0xfd   :  { %92 = vst.msk [vmem:[#allocation2] sm:$0x1] %vm25_vm1, %v90_v47  ;;  %v79_v49 = vadd.f32 %v78_v48, %v75_v46 }
  0xfe   :  { %107 = dma.vmem_to_hbm [thread:$0]  %s103_s26, 16, %s105_s29, [#allocation3]  }
  0xff   :  { %81 = vst.msk [vmem:[%s225_s3] sm:$0xff] %vm22_vm2, %v79_v49 }
 0x104   :  { %v84_v51 = vpop.xlane.xlu1 %83 }
 0x105   :  { %v85_v52 = vadd.f32 %v84_v51, %v82_v50 }
 0x107   :  { %86 = vst.msk [vmem:[%s226_s4] sm:$0xff] %vm22_vm2, %v85_v52 }
 0x108   :  { %151 = dma.done.wait [#allocation3], 16  }
 0x109   :  { %152 = vsyncadd [#allocation3], 4294967280 }
 0x10a   :  { %116 = vsyncpa [#allocation3], 1 }

</bundles_post_ra>
